<compile_context>
chip_gen: v5e
topology: v5e:2x2
jax: 0.10.0
libtpu: 0.0.40
codegen_flags: <defaults>
</compile_context>

<pallas_src>
import functools
import math

import jax
import jax.numpy as jnp
from jax.experimental import pallas as pl
from jax.experimental.pallas import tpu as pltpu


# ----------------------------------------------------------------------------
# In-kernel helpers
# ----------------------------------------------------------------------------
def _gelu_tanh(x):
    # tanh-approx GELU: 0.5*x*(1+tanh(sqrt(2/pi)*(x+0.044715*x^3))).
    # tanh lowers to the EUP (separate VLIW slot), keeping the VALU free.
    c = x.dtype.type(0.7978845608028654)   # sqrt(2/pi)
    a = x.dtype.type(0.044715)
    return 0.5 * x * (1.0 + jnp.tanh(c * (x + a * x * x * x)))


# ----------------------------------------------------------------------------
# Pallas kernel: fused MLP for a small group of images
#   channels on sublanes, pixels (H*W) on lanes -> lane-dense loads/stores
# ----------------------------------------------------------------------------
def _mlp_kernel(x_ref, w1_ref, b1_ref, w2_ref, b2_ref, o_ref, *, act_dtype):
    # x_ref : (Bt, C, N) f32      (N = H*W on the lane axis)
    # w1_ref: (Hd, C)    bf16     (Conv2d(dim, hidden, 1).weight squeezed)
    # b1_ref: (Hd, 1)    act_dtype
    # w2_ref: (C, Hd)    bf16     (Conv2d(hidden, dim, 1).weight squeezed)
    # b2_ref: (C, 1)     f32
    # o_ref : (Bt, C, N) f32
    bt = x_ref.shape[0]
    w1 = w1_ref[...]
    w2 = w2_ref[...]
    b1 = b1_ref[...]
    b2 = b2_ref[...]

    # Static unroll over the (tiny) per-step batch group; each iteration is a
    # clean 2-D (sublane x lane) pipeline on the MXU/VPU/EUP.
    for b in range(bt):
        x = x_ref[b].astype(jnp.bfloat16)                        # (C, N)
        # h = W1 @ x + b1  -> (Hd, N); f32 accumulation on the MXU.
        h = jnp.dot(w1, x, preferred_element_type=jnp.float32)
        h = h.astype(act_dtype) + b1
        h = _gelu_tanh(h)
        # y = W2 @ gelu(h) + b2 -> (C, N)
        y = jnp.dot(w2, h.astype(jnp.bfloat16),
                    preferred_element_type=jnp.float32)
        o_ref[b] = y + b2


# ----------------------------------------------------------------------------
# Wrapper
# ----------------------------------------------------------------------------
def mlp_forward(x_nchw, params):
    """Forward of the PyTorch MLP module. x_nchw: (B, dim, H, W) float32."""
    B, C, H, W = x_nchw.shape
    N = H * W
    Hd = params["w1"].shape[0]

    # Chip-aware choices (string check on the local device kind).
    kind = jax.devices()[0].device_kind.lower()
    is_v7x = "7" in kind                       # 2 TensorCores per chip
    has_bf16_vpu = is_v7x or "v6" in kind      # bf16 VPU/EUP on v6e & v7x only
    act_dtype = jnp.bfloat16 if has_bf16_vpu else jnp.float32

    # How many grid steps along the batch:
    #  - v5e/v6e (1 TC): one step holding the whole batch -> fewest per-step
    #    (~0.35us) pipeline overheads.
    #  - v7x (2 TCs): keep 2 "parallel" steps so both TensorCores are busy.
    if is_v7x and B >= 2 and B % 2 == 0:
        num_steps = 2
    else:
        num_steps = 1
    # Conservative VMEM guard (x + out blocks, double-buffered by the
    # pipeline); sized against v7x's smaller scoped VMEM, not v5e/v6e's 128MiB.
    bt = B // num_steps
    if 2 * 2 * bt * C * N * 4 > (8 << 20):
        num_steps = B                           # fall back to one image / step
    Bt = B // num_steps
    # TODO(synk): add an N-tiling grid axis (lane-dense >=512-wide tiles) before
    # scaling H*W / hidden_dim to sizes where a per-image block no longer fits
    # the per-generation VMEM budget (v7x: 64 MiB physical / 32 MiB scoped).

    x_tok = x_nchw.reshape(B, C, N).astype(jnp.float32)      # free reshape
    w1 = params["w1"].astype(jnp.bfloat16)                   # (Hd, C)
    w2 = params["w2"].astype(jnp.bfloat16)                   # (C, Hd)
    b1 = params["b1"].reshape(Hd, 1).astype(act_dtype)
    b2 = params["b2"].reshape(C, 1).astype(jnp.float32)

    kernel = functools.partial(_mlp_kernel, act_dtype=act_dtype)

    # NOTE: block last-two dims equal the full array dims, so the (8,128)
    # constraint is always satisfied; blocks here are lane-dense (N=256) and
    # tiny, far under every generation's VMEM limit.
    # NOTE: weights/biases use constant index_maps so they are DMA'd once; a
    # `pipeline_mode=pl.Buffered(1)` on them would reclaim the second buffer's
    # VMEM, but that only matters once tiles get large -- left default here.
    out = pl.pallas_call(
        kernel,
        out_shape=jax.ShapeDtypeStruct((B, C, N), jnp.float32),
        grid=(num_steps,),
        in_specs=[
            pl.BlockSpec((Bt, C, N), lambda i: (i, 0, 0)),    # x (image group)
            pl.BlockSpec((Hd, C), lambda i: (0, 0)),          # w1
            pl.BlockSpec((Hd, 1), lambda i: (0, 0)),          # b1
            pl.BlockSpec((C, Hd), lambda i: (0, 0)),          # w2
            pl.BlockSpec((C, 1), lambda i: (0, 0)),           # b2
        ],
        out_specs=pl.BlockSpec((Bt, C, N), lambda i: (i, 0, 0)),
        compiler_params=pltpu.CompilerParams(
            dimension_semantics=("parallel",)),
    )(x_tok, w1, b1, w2, b2)
    return out.reshape(B, C, H, W)


# ----------------------------------------------------------------------------
# Pure-JAX reference (f32, exact erf GELU) for a sanity check
# ----------------------------------------------------------------------------
def _mlp_reference(x_nchw, params):
    B, C, H, W = x_nchw.shape
    x = x_nchw.reshape(B, C, H * W)
    h = jnp.einsum("oc,bcn->bon", params["w1"], x) + params["b1"][None, :, None]
    h = 0.5 * h * (1.0 + jax.lax.erf(h / jnp.sqrt(2.0)))
    y = jnp.einsum("co,bon->bcn", params["w2"], h) + params["b2"][None, :, None]
    return y.reshape(B, C, H, W)


# ----------------------------------------------------------------------------
# Main
# ----------------------------------------------------------------------------
if __name__ == "__main__":
    dim, hidden_dim = 32, 64
    B, H, W = 2, 16, 16

    key = jax.random.PRNGKey(0)
    kx, k1, k2, k3, k4 = jax.random.split(key, 5)
    x = jax.random.normal(kx, (B, dim, H, W), dtype=jnp.float32)
    params = dict(
        w1=jax.random.normal(k1, (hidden_dim, dim), jnp.float32) * 0.05,
        b1=jax.random.normal(k2, (hidden_dim,), jnp.float32) * 0.01,
        w2=jax.random.normal(k3, (dim, hidden_dim), jnp.float32) * 0.05,
        b2=jax.random.normal(k4, (dim,), jnp.float32) * 0.01,
    )

    out = jax.jit(mlp_forward)(x, params)
    jax.block_until_ready(out)

    assert out.shape == (B, dim, H, W)
    assert bool(jnp.all(jnp.isfinite(out)))
    ref = _mlp_reference(x, params)
    # bf16 matmul inputs + tanh-approx GELU vs exact-erf f32 reference.
    assert bool(jnp.allclose(out, ref, atol=2e-2, rtol=2e-2))
    print("KERNEL_OK")
</pallas_src>

<mosaic_0001>
module attributes {stable_mosaic.version = 11 : i64} {
  func.func @_mlp_kernel(%arg0: i32, %arg1: memref<2x32x256xf32, #tpu.memory_space<vmem>>, %arg2: memref<64x32xbf16, #tpu.memory_space<vmem>>, %arg3: memref<64x1xf32, #tpu.memory_space<vmem>>, %arg4: memref<32x64xbf16, #tpu.memory_space<vmem>>, %arg5: memref<32x1xf32, #tpu.memory_space<vmem>>, %arg6: memref<2x32x256xf32, #tpu.memory_space<vmem>>) attributes {dimension_semantics = [#tpu.dimension_semantics<parallel>], iteration_bounds = array<i64: 1>, scalar_prefetch = 0 : i64, scratch_operands = 0 : i64, tpu.core_type = #tpu.core_type<tc>, window_params = [{transform_indices = @transform_0, window_bounds = array<i64: 2, 32, 256>}, {pipeline_mode = #tpu.pipeline_mode<synchronous>, transform_indices = @transform_1, window_bounds = array<i64: 64, 32>}, {pipeline_mode = #tpu.pipeline_mode<synchronous>, transform_indices = @transform_2, window_bounds = array<i64: 64, 1>}, {pipeline_mode = #tpu.pipeline_mode<synchronous>, transform_indices = @transform_3, window_bounds = array<i64: 32, 64>}, {pipeline_mode = #tpu.pipeline_mode<synchronous>, transform_indices = @transform_4, window_bounds = array<i64: 32, 1>}, {transform_indices = @transform_5, window_bounds = array<i64: 2, 32, 256>}]} {
    %c0 = arith.constant 0 : index
    %c0_0 = arith.constant 0 : index
    %0 = vector.load %arg2[%c0, %c0_0] : memref<64x32xbf16, #tpu.memory_space<vmem>>, vector<64x32xbf16>
    %c0_1 = arith.constant 0 : index
    %c0_2 = arith.constant 0 : index
    %1 = vector.load %arg4[%c0_1, %c0_2] : memref<32x64xbf16, #tpu.memory_space<vmem>>, vector<32x64xbf16>
    %c0_3 = arith.constant 0 : index
    %c0_4 = arith.constant 0 : index
    %2 = vector.load %arg3[%c0_3, %c0_4] : memref<64x1xf32, #tpu.memory_space<vmem>>, vector<64x1xf32>
    %c0_5 = arith.constant 0 : index
    %c0_6 = arith.constant 0 : index
    %3 = vector.load %arg5[%c0_5, %c0_6] : memref<32x1xf32, #tpu.memory_space<vmem>>, vector<32x1xf32>
    %c0_7 = arith.constant 0 : index
    %c0_8 = arith.constant 0 : index
    %c0_9 = arith.constant 0 : index
    %4 = vector.load %arg1[%c0_7, %c0_8, %c0_9] : memref<2x32x256xf32, #tpu.memory_space<vmem>>, vector<1x32x256xf32>
    %5 = vector.shape_cast %4 : vector<1x32x256xf32> to vector<32x256xf32>
    %6 = arith.truncf %5 : vector<32x256xf32> to vector<32x256xbf16>
    %cst = arith.constant dense<0.000000e+00> : vector<64x256xf32>
    %7 = tpu.matmul %0, %6, %cst {dimension_numbers = #tpu.dot_dimension_numbers<[1], [0], [0], [1], [0, 0, 1, 1], [], []>} : vector<64x32xbf16>, vector<32x256xbf16>, vector<64x256xf32> -> vector<64x256xf32>
    %8 = vector.broadcast %2 : vector<64x1xf32> to vector<64x256xf32>
    %9 = arith.addf %7, %8 : vector<64x256xf32>
    %cst_10 = arith.constant 5.000000e-01 : f32
    %10 = vector.broadcast %cst_10 : f32 to vector<64x256xf32>
    %11 = arith.mulf %10, %9 : vector<64x256xf32>
    %cst_11 = arith.constant 4.471500e-02 : f32
    %12 = vector.broadcast %cst_11 : f32 to vector<64x256xf32>
    %13 = arith.mulf %12, %9 : vector<64x256xf32>
    %14 = arith.mulf %13, %9 : vector<64x256xf32>
    %15 = arith.mulf %14, %9 : vector<64x256xf32>
    %16 = arith.addf %9, %15 : vector<64x256xf32>
    %cst_12 = arith.constant 0.797884583 : f32
    %17 = vector.broadcast %cst_12 : f32 to vector<64x256xf32>
    %18 = arith.mulf %17, %16 : vector<64x256xf32>
    %19 = math.tanh %18 : vector<64x256xf32>
    %cst_13 = arith.constant 1.000000e+00 : f32
    %20 = vector.broadcast %cst_13 : f32 to vector<64x256xf32>
    %21 = arith.addf %20, %19 : vector<64x256xf32>
    %22 = arith.mulf %11, %21 : vector<64x256xf32>
    %23 = arith.truncf %22 : vector<64x256xf32> to vector<64x256xbf16>
    %cst_14 = arith.constant dense<0.000000e+00> : vector<32x256xf32>
    %24 = tpu.matmul %1, %23, %cst_14 {dimension_numbers = #tpu.dot_dimension_numbers<[1], [0], [0], [1], [0, 0, 1, 1], [], []>} : vector<32x64xbf16>, vector<64x256xbf16>, vector<32x256xf32> -> vector<32x256xf32>
    %25 = vector.broadcast %3 : vector<32x1xf32> to vector<32x256xf32>
    %26 = arith.addf %24, %25 : vector<32x256xf32>
    %c0_15 = arith.constant 0 : index
    %c0_16 = arith.constant 0 : index
    %c0_17 = arith.constant 0 : index
    %27 = vector.load %arg6[%c0_15, %c0_16, %c0_17] : memref<2x32x256xf32, #tpu.memory_space<vmem>>, vector<1x32x256xf32>
    %28 = vector.shape_cast %27 : vector<1x32x256xf32> to vector<32x256xf32>
    %29 = vector.shape_cast %26 : vector<32x256xf32> to vector<1x32x256xf32>
    tpu.vector_store %arg6[%c0_15, %c0_16, %c0_17], %29 {strides = array<i32>} : memref<2x32x256xf32, #tpu.memory_space<vmem>>, vector<1x32x256xf32>,
    %c1 = arith.constant 1 : index
    %c0_18 = arith.constant 0 : index
    %c0_19 = arith.constant 0 : index
    %30 = vector.load %arg1[%c1, %c0_18, %c0_19] : memref<2x32x256xf32, #tpu.memory_space<vmem>>, vector<1x32x256xf32>
    %31 = vector.shape_cast %30 : vector<1x32x256xf32> to vector<32x256xf32>
    %32 = arith.truncf %31 : vector<32x256xf32> to vector<32x256xbf16>
    %cst_20 = arith.constant dense<0.000000e+00> : vector<64x256xf32>
    %33 = tpu.matmul %0, %32, %cst_20 {dimension_numbers = #tpu.dot_dimension_numbers<[1], [0], [0], [1], [0, 0, 1, 1], [], []>} : vector<64x32xbf16>, vector<32x256xbf16>, vector<64x256xf32> -> vector<64x256xf32>
    %34 = vector.broadcast %2 : vector<64x1xf32> to vector<64x256xf32>
    %35 = arith.addf %33, %34 : vector<64x256xf32>
    %cst_21 = arith.constant 5.000000e-01 : f32
    %36 = vector.broadcast %cst_21 : f32 to vector<64x256xf32>
    %37 = arith.mulf %36, %35 : vector<64x256xf32>
    %cst_22 = arith.constant 4.471500e-02 : f32
    %38 = vector.broadcast %cst_22 : f32 to vector<64x256xf32>
    %39 = arith.mulf %38, %35 : vector<64x256xf32>
    %40 = arith.mulf %39, %35 : vector<64x256xf32>
    %41 = arith.mulf %40, %35 : vector<64x256xf32>
    %42 = arith.addf %35, %41 : vector<64x256xf32>
    %cst_23 = arith.constant 0.797884583 : f32
    %43 = vector.broadcast %cst_23 : f32 to vector<64x256xf32>
    %44 = arith.mulf %43, %42 : vector<64x256xf32>
    %45 = math.tanh %44 : vector<64x256xf32>
    %cst_24 = arith.constant 1.000000e+00 : f32
    %46 = vector.broadcast %cst_24 : f32 to vector<64x256xf32>
    %47 = arith.addf %46, %45 : vector<64x256xf32>
    %48 = arith.mulf %37, %47 : vector<64x256xf32>
    %49 = arith.truncf %48 : vector<64x256xf32> to vector<64x256xbf16>
    %cst_25 = arith.constant dense<0.000000e+00> : vector<32x256xf32>
    %50 = tpu.matmul %1, %49, %cst_25 {dimension_numbers = #tpu.dot_dimension_numbers<[1], [0], [0], [1], [0, 0, 1, 1], [], []>} : vector<32x64xbf16>, vector<64x256xbf16>, vector<32x256xf32> -> vector<32x256xf32>
    %51 = vector.broadcast %3 : vector<32x1xf32> to vector<32x256xf32>
    %52 = arith.addf %50, %51 : vector<32x256xf32>
    %c1_26 = arith.constant 1 : index
    %c0_27 = arith.constant 0 : index
    %c0_28 = arith.constant 0 : index
    %53 = vector.load %arg6[%c1_26, %c0_27, %c0_28] : memref<2x32x256xf32, #tpu.memory_space<vmem>>, vector<1x32x256xf32>
    %54 = vector.shape_cast %53 : vector<1x32x256xf32> to vector<32x256xf32>
    %55 = vector.shape_cast %52 : vector<32x256xf32> to vector<1x32x256xf32>
    tpu.vector_store %arg6[%c1_26, %c0_27, %c0_28], %55 {strides = array<i32>} : memref<2x32x256xf32, #tpu.memory_space<vmem>>, vector<1x32x256xf32>,
    return
  }
  func.func @transform_0(%arg0: i32) -> (i32, i32, i32) {
    %c0_i32 = arith.constant 0 : i32
    %c0_i32_0 = arith.constant 0 : i32
    %c0_i32_1 = arith.constant 0 : i32
    return %arg0, %c0_i32, %c0_i32_0 : i32, i32, i32
  }
  func.func @transform_1(%arg0: i32) -> (i32, i32) {
    %c0_i32 = arith.constant 0 : i32
    %c0_i32_0 = arith.constant 0 : i32
    %c0_i32_1 = arith.constant 0 : i32
    return %c0_i32, %c0_i32_0 : i32, i32
  }
  func.func @transform_2(%arg0: i32) -> (i32, i32) {
    %c0_i32 = arith.constant 0 : i32
    %c0_i32_0 = arith.constant 0 : i32
    %c0_i32_1 = arith.constant 0 : i32
    return %c0_i32, %c0_i32_0 : i32, i32
  }
  func.func @transform_3(%arg0: i32) -> (i32, i32) {
    %c0_i32 = arith.constant 0 : i32
    %c0_i32_0 = arith.constant 0 : i32
    %c0_i32_1 = arith.constant 0 : i32
    return %c0_i32, %c0_i32_0 : i32, i32
  }
  func.func @transform_4(%arg0: i32) -> (i32, i32) {
    %c0_i32 = arith.constant 0 : i32
    %c0_i32_0 = arith.constant 0 : i32
    %c0_i32_1 = arith.constant 0 : i32
    return %c0_i32, %c0_i32_0 : i32, i32
  }
  func.func @transform_5(%arg0: i32) -> (i32, i32, i32) {
    %c0_i32 = arith.constant 0 : i32
    %c0_i32_0 = arith.constant 0 : i32
    %c0_i32_1 = arith.constant 0 : i32
    return %arg0, %c0_i32, %c0_i32_0 : i32, i32, i32
  }
}

</mosaic_0001>

<bundles_post_ra>
// kernel: mlp_forward.1
= control target key start
LH: loop header
LB: loop body
LE: loop exit
PB: predicated region body
PF: predicated region fallthrough
CT: control target
= control target key end

     0   :  { %v835_v3 = vmov 0   ;;  %vm117_vm0 = vcmask 261120   ;;  %vm370_vm1 = vcmask 523264   ;;  %s1390_s0 = inlined_call_operand.vmem [shape: f32[2,32,256], index: 0, kind: input, shape index: {}]   ;;  %s1391_s2 = inlined_call_operand.vmem [shape: f32[64,1], index: 2, kind: input, shape index: {}]   ;;  %s1392_s1 = inlined_call_operand.vmem [shape: bf16[64,32], index: 1, kind: input, shape index: {}]   ;;  %s1393_s4 = inlined_call_operand.vmem [shape: f32[32,1], index: 4, kind: input, shape index: {}]   ;;  %s1394_s3 = inlined_call_operand.vmem [shape: bf16[32,64], index: 3, kind: input, shape index: {}]   ;;  %s1395_s5 = inlined_call_operand.vmem [shape: f32[2,32,256], index: 5, kind: output, shape index: {}]  }
   0x1   :  { %v49_v0 = vld [vmem:[%s1390_s0 + $0x20] sm:$0xff]  ;;  %v51_v1 = vld [vmem:[%s1390_s0 + $0x30] sm:$0xff]  ;;  %v50_v2 = vld [vmem:[%s1390_s0 + $0x28] sm:$0xff]  ;;  %768 = vset.pattern.permute.xlu0 %v835_v3  ;;  %769 = vset.pattern.permute.xlu1 %v835_v3 }
   0x2   :  { %v55_v4 = vpack.c.bf16 %v51_v1, %v49_v0  ;;  %v52_v5 = vld [vmem:[%s1390_s0 + $0x38] sm:$0xff]  ;;  %v39_v6 = vld [vmem:[%s1391_s2 + $0x30] sm:$0xff]  ;;  %v45_v7 = vld [vmem:[%s1390_s0] sm:$0xff]  ;;  %770 = vset.pattern.permute.xlu2 %v835_v3 }
   0x3   :  { %v56_v8 = vpack.c.bf16 %v52_v5, %v50_v2  ;;  %89 = vperm.xlu0 %768, %v39_v6   ;;  %v47_v9 = vld [vmem:[%s1390_s0 + $0x10] sm:$0xff]  ;;  %v46_v10 = vld [vmem:[%s1390_s0 + $0x8] sm:$0xff]  ;;  %v48_v11 = vld [vmem:[%s1390_s0 + $0x18] sm:$0xff] }
   0x4   :  { %136 = vmatpush.bf16.msra.mxu0 %v55_v4  ;;  %v53_v12 = vpack.c.bf16 %v47_v9, %v45_v7  ;;  %v37_v13 = vld [vmem:[%s1391_s2 + $0x20] sm:$0xff]  ;;  %v54_v14 = vpack.c.bf16 %v48_v11, %v46_v10  ;;  %v40_v16 = vld [vmem:[%s1391_s2 + $0x38] sm:$0xff]  ;;  %v38_v17 = vld [vmem:[%s1391_s2 + $0x28] sm:$0xff] }
   0x5   :  { %165 = vmatpush.bf16.msra.mxu1 %v56_v8  ;;  %79 = vperm.xlu1 %769, %v37_v13   ;;  %v899_v15 = vld [vmem:[%s1392_s1] sm:$0xff]  ;;  %v34_v19 = vld [vmem:[%s1391_s2 + $0x8] sm:$0xff]  ;;  %v35_v21 = vld [vmem:[%s1391_s2 + $0x10] sm:$0xff] }
   0x6   :  { %v33_v18 = vld [vmem:[%s1391_s2] sm:$0xff]  ;;  %v920_v20 = vld [vmem:[%s1392_s1 + $0x8] sm:$0xff]  ;;  %69 = vperm.xlu2 %770, %v35_v21   ;;  %v43_v23 = vld [vmem:[%s1393_s4 + $0x10] sm:$0xff] }
   0x7   :  { %v42_v22 = vld [vmem:[%s1393_s4 + $0x8] sm:$0xff]  ;;  %v36_v24 = vld [vmem:[%s1391_s2 + $0x18] sm:$0xff]  ;;  %v941_v25 = vld [vmem:[%s1392_s1 + $0x10] sm:$0xff] }
   0x8   :  { %137 = vmatpush.bf16.msra.mxu0 %v53_v12  ;;  %v41_v26 = vld [vmem:[%s1393_s4] sm:$0xff]  ;;  %v44_v27 = vld [vmem:[%s1393_s4 + $0x18] sm:$0xff] }
   0x9   :  { %166 = vmatpush.bf16.msra.mxu1 %v54_v14  ;;  %v956_v28 = vld [vmem:[%s1392_s1 + $0x18] sm:$0xff] }
   0xb   :  { %713 = vmatmul.msk.bf16.vlgmr.msra.gmra.mxu0 %vm117_vm0, %v899_v15  ;;  %94 = vperm.xlu0 %768, %v40_v16  }
   0xc   :  { %717 = vmatmul.msk.bf16.vlgmr.msra.gmra.mxu1 %vm117_vm0, %v899_v15 }
   0xd   :  { %84 = vperm.xlu1 %769, %v38_v17  }
   0xe   :  { %74 = vperm.xlu2 %770, %v36_v24  }
  0x13   :  { %59 = vperm.xlu0 %768, %v33_v18  }
  0x15   :  { %64 = vperm.xlu1 %769, %v34_v19  }
  0x16   :  { %342 = vperm.xlu2 %770, %v41_v26  }
  0x1b   :  { %714 = vmatmul.msk.bf16.gmra.mxu0 %vm117_vm0, %v920_v20  ;;  %347 = vperm.xlu0 %768, %v42_v22  }
  0x1c   :  { %718 = vmatmul.msk.bf16.gmra.mxu1 %vm117_vm0, %v920_v20 }
  0x1d   :  { %352 = vperm.xlu1 %769, %v43_v23  }
  0x1e   :  { %357 = vperm.xlu2 %770, %v44_v27  }
  0x2b   :  { %715 = vmatmul.msk.bf16.gmra.mxu0 %vm117_vm0, %v941_v25 }
  0x2c   :  { %719 = vmatmul.msk.bf16.gmra.mxu1 %vm117_vm0, %v941_v25 }
  0x3b   :  { %716 = vmatmul.msk.bf16.gmra.mxu0 %vm117_vm0, %v956_v28 }
  0x3c   :  { %720 = vmatmul.msk.bf16.gmra.mxu1 %vm117_vm0, %v956_v28 }
  0x60   :  { %v979_v47 = vpop.permute.xlu2 %69 }
  0x68   :  { %v1001_v61 = vpop.permute.xlu2 %74 }
  0x75   :  { %v962_v31 = vpop.permute.xlu0 %89 }
  0x77   :  { %v964_v34 = vpop.permute.xlu1 %79 }
  0x7d   :  { %v966_v35 = vpop.permute.xlu0 %94 }
  0x7f   :  { %v968_v39 = vpop.permute.xlu1 %84 }
  0x85   :  { %v970_v41 = vpop.permute.xlu0 %59 }
  0x87   :  { %v981_v48 = vpop.permute.xlu1 %64 }
  0x88   :  { %v139_v29 = vpop.f32.mrf.mxu0 }
  0x89   :  { %v168_v30 = vpop.f32.mrf.mxu1  ;;  %v973_v42 = vadd.f32 %v139_v29, %v970_v41 }
  0x8a   :  { %v977_v45 = vadd.f32 %v168_v30, %v970_v41 }
  0x8b   :  { %v204_v44 = vmul.f32 0.044715, %v973_v42 }
  0x8c   :  { %v205_v49 = vmul.f32 0.044715, %v977_v45 }
  0x8d   :  { %v220_v50 = vmul.f32 %v204_v44, %v973_v42 }
  0x8e   :  { %v221_v57 = vmul.f32 %v205_v49, %v977_v45 }
  0x8f   :  { %v236_v56 = vmul.f32 %v220_v50, %v973_v42 }
  0x90   :  { %v141_v32 = vpop.f32.mrf.mxu0  ;;  %v237_v1 = vmul.f32 %v221_v57, %v977_v45 }
  0x91   :  { %v170_v33 = vpop.f32.mrf.mxu1  ;;  %v986_v51 = vadd.f32 %v141_v32, %v981_v48  ;;  %v252_v0 = vadd.f32 %v236_v56, %v973_v42 }
  0x92   :  { %v1010_v2 = vadd.f32 %v170_v33, %v981_v48  ;;  %v253_v16 = vadd.f32 %v237_v1, %v977_v45 }
  0x93   :  { %v206_v58 = vmul.f32 0.044715, %v986_v51  ;;  %v268_v14 = vmul.f32 0.7978846, %v252_v0 }
  0x94   :  { %v207_v17 = vmul.f32 0.044715, %v1010_v2 }
  0x95   :  { %v222_v3 = vmul.f32 %v206_v58, %v986_v51  ;;  %771 = vtanh.f32 %v268_v14 }
  0x96   :  { %v223_v44 = vmul.f32 %v207_v17, %v1010_v2 }
  0x97   :  { %v238_v21 = vmul.f32 %v222_v3, %v986_v51 }
  0x98   :  { %v144_v36 = vpop.f32.mrf.mxu0 }
  0x99   :  { %v173_v37 = vpop.f32.mrf.mxu1  ;;  %v1024_v11 = vadd.f32 %v144_v36, %v979_v47 }
  0x9a   :  { %v1032_v18 = vadd.f32 %v173_v37, %v979_v47  ;;  %v269_v37 = vmul.f32 0.7978846, %v253_v16 }
  0x9b   :  { %v208_v33 = vmul.f32 0.044715, %v1024_v11 }
  0x9c   :  { %773 = vtanh.f32 %v269_v37 }
  0x9d   :  { %v224_v3 = vmul.f32 %v208_v33, %v1024_v11 }
  0xa0   :  { %v146_v38 = vpop.f32.mrf.mxu0 }
  0xa1   :  { %v175_v40 = vpop.f32.mrf.mxu1  ;;  %v1014_v4 = vadd.f32 %v146_v38, %v1001_v61  ;;  %v209_v38 = vmul.f32 0.044715, %v1032_v18 }
  0xa2   :  { %v1019_v7 = vadd.f32 %v175_v40, %v1001_v61 }
  0xa3   :  { %v210_v22 = vmul.f32 0.044715, %v1014_v4 }
  0xa4   :  { %v211_v27 = vmul.f32 0.044715, %v1019_v7 }
  0xa8   :  { %v149_v43 = vpop.f32.mrf.mxu0 }
  0xa9   :  { %v178_v46 = vpop.f32.mrf.mxu1  ;;  %v989_v52 = vadd.f32 %v149_v43, %v964_v34  ;;  %v254_v43 = vadd.f32 %v238_v21, %v986_v51 }
  0xaa   :  { %v992_v53 = vadd.f32 %v178_v46, %v964_v34 }
  0xab   :  { %v212_v59 = vmul.f32 0.044715, %v989_v52 }
  0xac   :  { %v213_v62 = vmul.f32 0.044715, %v992_v53 }
  0xad   :  { %v228_v6 = vmul.f32 %v212_v59, %v989_v52  ;;  %v227_v59 = vmul.f32 %v211_v27, %v1019_v7 }
  0xae   :  { %v229_v10 = vmul.f32 %v213_v62, %v992_v53 }
  0xaf   :  { %v244_v26 = vmul.f32 %v228_v6, %v989_v52 }
  0xb0   :  { %v151_v54 = vpop.f32.mrf.mxu0  ;;  %v245_v32 = vmul.f32 %v229_v10, %v992_v53  ;;  %v1070_v10 = vpop.eup %771 }
  0xb1   :  { %v180_v55 = vpop.f32.mrf.mxu1  ;;  %v999_v60 = vadd.f32 %v151_v54, %v968_v39  ;;  %v260_v50 = vadd.f32 %v244_v26, %v989_v52  ;;  %v226_v54 = vmul.f32 %v210_v22, %v1014_v4  ;;  %v1083_v37 = vpop.eup %773 }
  0xb2   :  { %v1005_v63 = vadd.f32 %v180_v55, %v968_v39  ;;  %v261_v58 = vadd.f32 %v245_v32, %v992_v53 }
  0xb3   :  { %v214_v5 = vmul.f32 0.044715, %v999_v60  ;;  %v276_v16 = vmul.f32 0.7978846, %v260_v50  ;;  %v242_v17 = vmul.f32 %v226_v54, %v1014_v4 }
  0xb4   :  { %v215_v8 = vmul.f32 0.044715, %v1005_v63 }
  0xb5   :  { %v230_v24 = vmul.f32 %v214_v5, %v999_v60 }
  0xb6   :  { %v231_v30 = vmul.f32 %v215_v8, %v1005_v63  ;;  %v225_v8 = vmul.f32 %v209_v38, %v1032_v18 }
  0xb7   :  { %v246_v49 = vmul.f32 %v230_v24, %v999_v60  ;;  %v243_v24 = vmul.f32 %v227_v59, %v1019_v7 }
  0xb8   :  { %v154_v9 = vpop.f32.mrf.mxu0  ;;  %v247_v57 = vmul.f32 %v231_v30, %v1005_v63  ;;  %v239_v30 = vmul.f32 %v223_v44, %v1010_v2 }
  0xb9   :  { %v1027_v12 = vadd.f32 %v154_v9, %v962_v31  ;;  %v183_v13 = vpop.f32.mrf.mxu1  ;;  %v270_v9 = vmul.f32 0.7978846, %v254_v43  ;;  %v262_v14 = vadd.f32 %v246_v49, %v999_v60  ;;  %v258_v43 = vadd.f32 %v242_v17, %v1014_v4 }
  0xba   :  { %v1035_v19 = vadd.f32 %v183_v13, %v962_v31  ;;  %v263_v22 = vadd.f32 %v247_v57, %v1005_v63  ;;  %v259_v44 = vadd.f32 %v243_v24, %v1019_v7  ;;  %v255_v59 = vadd.f32 %v239_v30, %v1010_v2 }
  0xbb   :  { %v216_v23 = vmul.f32 0.044715, %v1027_v12  ;;  %775 = vtanh.f32 %v270_v9 }
  0xbc   :  { %v217_v29 = vmul.f32 0.044715, %v1035_v19  ;;  %777 = vtanh.f32 %v276_v16  ;;  %v279_v49 = vmul.f32 0.7978846, %v263_v22  ;;  %v271_v16 = vmul.f32 0.7978846, %v255_v59 }
  0xbd   :  { %v232_v36 = vmul.f32 %v216_v23, %v1027_v12  ;;  %v277_v23 = vmul.f32 0.7978846, %v261_v58  ;;  %v274_v58 = vmul.f32 0.7978846, %v258_v43 }
  0xbe   :  { %v233_v40 = vmul.f32 %v217_v29, %v1035_v19  ;;  %v240_v29 = vmul.f32 %v224_v3, %v1024_v11  ;;  %v275_v3 = vmul.f32 0.7978846, %v259_v44 }
  0xbf   :  { %v248_v46 = vmul.f32 %v232_v36, %v1027_v12  ;;  %v241_v36 = vmul.f32 %v225_v8, %v1032_v18  ;;  %779 = vtanh.f32 %v277_v23 }
  0xc0   :  { %v156_v55 = vpop.f32.mrf.mxu0  ;;  %v249_v56 = vmul.f32 %v233_v40, %v1035_v19  ;;  %v278_v40 = vmul.f32 0.7978846, %v262_v14  ;;  %v256_v54 = vadd.f32 %v240_v29, %v1024_v11  ;;  %v200_v29 = vmul.f32 0.5, %v1027_v12 }
  0xc1   :  { %v1061_v62 = vadd.f32 %v156_v55, %v966_v35  ;;  %v185_v0 = vpop.f32.mrf.mxu1  ;;  %v264_v1 = vadd.f32 %v248_v46, %v1027_v12 }
  0xc2   :  { %v1066_v5 = vadd.f32 %v185_v0, %v966_v35  ;;  %v265_v6 = vadd.f32 %v249_v56, %v1035_v19  ;;  %v257_v56 = vadd.f32 %v241_v36, %v1032_v18  ;;  %v1094_v0 = vpop.eup %775  ;;  %v272_v8 = vmul.f32 0.7978846, %v256_v54 }
  0xc3   :  { %v218_v13 = vmul.f32 0.044715, %v1061_v62  ;;  %v280_v27 = vmul.f32 0.7978846, %v264_v1  ;;  %v202_v30 = vmul.f32 0.5, %v1061_v62  ;;  %v198_v54 = vmul.f32 0.5, %v999_v60 }
  0xc4   :  { %v219_v21 = vmul.f32 0.044715, %v1066_v5  ;;  %v281_v33 = vmul.f32 0.7978846, %v265_v6  ;;  %v778_v6 = vpop.eup %777 }
  0xc5   :  { %v234_v26 = vmul.f32 %v218_v13, %v1061_v62  ;;  %781 = vtanh.f32 %v280_v27  ;;  %v780_v9 = vpop.eup %779  ;;  %v273_v13 = vmul.f32 0.7978846, %v257_v56 }
  0xc6   :  { %v235_v32 = vmul.f32 %v219_v21, %v1066_v5  ;;  %783 = vtanh.f32 %v281_v33 }
  0xc7   :  { %v250_v38 = vmul.f32 %v234_v26, %v1061_v62  ;;  %785 = vtanh.f32 %v278_v40  ;;  %v203_v40 = vmul.f32 0.5, %v1066_v5 }
  0xc8   :  { %v251_v46 = vmul.f32 %v235_v32, %v1066_v5  ;;  %787 = vtanh.f32 %v279_v49 }
  0xc9   :  { %v266_v50 = vadd.f32 %v250_v38, %v1061_v62  ;;  %v201_v38 = vmul.f32 0.5, %v1035_v19  ;;  %v199_v62 = vmul.f32 0.5, %v1005_v63  ;;  %v196_v19 = vmul.f32 0.5, %v989_v52 }
  0xca   :  { %v267_v55 = vadd.f32 %v251_v46, %v1066_v5  ;;  %v192_v52 = vmul.f32 0.5, %v1024_v11  ;;  %v301_v11 = vadd.f32 1.0, %v1083_v37 }
  0xcb   :  { %v282_v57 = vmul.f32 0.7978846, %v266_v50  ;;  %v782_v14 = vpop.eup %781 }
  0xcc   :  { %v283_v1 = vmul.f32 0.7978846, %v267_v55  ;;  %v784_v17 = vpop.eup %783  ;;  %v312_v23 = vadd.f32 1.0, %v782_v14  ;;  %v308_v55 = vadd.f32 1.0, %v778_v6  ;;  %v197_v14 = vmul.f32 0.5, %v992_v53 }
  0xcd   :  { %789 = vtanh.f32 %v282_v57  ;;  %v786_v21 = vpop.eup %785  ;;  %v313_v26 = vadd.f32 1.0, %v784_v17  ;;  %v194_v6 = vmul.f32 0.5, %v1014_v4  ;;  %v193_v53 = vmul.f32 0.5, %v1032_v18  ;;  %v737_v18 = vld [vmem:[%s1390_s0 + $0x60] sm:$0xff] }
  0xce   :  { %791 = vtanh.f32 %v283_v1  ;;  %v788_v22 = vpop.eup %787  ;;  %v310_v33 = vadd.f32 1.0, %v786_v21  ;;  %v328_v44 = vmul.f32 %v312_v23, %v200_v29  ;;  %v324_v60 = vmul.f32 %v308_v55, %v196_v19  ;;  %v735_v55 = vld [vmem:[%s1390_s0 + $0x50] sm:$0xff]  ;;  %v1173_v19 = vpop.permute.xlu2 %342 }
  0xcf   :  { %793 = vtanh.f32 %v274_v58  ;;  %v311_v46 = vadd.f32 1.0, %v788_v22  ;;  %v329_v57 = vmul.f32 %v313_v26, %v201_v38  ;;  %v309_v58 = vadd.f32 1.0, %v780_v9 }
  0xd0   :  { %795 = vtanh.f32 %v275_v3  ;;  %v326_v3 = vmul.f32 %v310_v33, %v198_v54  ;;  %v195_v9 = vmul.f32 0.5, %v1019_v7  ;;  %v302_v26 = vadd.f32 1.0, %v1094_v0 }
  0xd1   :  { %797 = vtanh.f32 %v272_v8  ;;  %v325_v63 = vmul.f32 %v309_v58, %v197_v14  ;;  %v190_v4 = vmul.f32 0.5, %v986_v51  ;;  %v300_v33 = vadd.f32 1.0, %v1070_v10  ;;  %v739_v51 = vld [vmem:[%s1390_s0 + $0x70] sm:$0xff] }
  0xd2   :  { %799 = vtanh.f32 %v273_v13  ;;  %v336_v23 = vpack.c.bf16 %v326_v3, %v324_v60  ;;  %v188_v0 = vmul.f32 0.5, %v973_v42  ;;  %v189_v10 = vmul.f32 0.5, %v977_v45  ;;  %v740_v42 = vld [vmem:[%s1390_s0 + $0x78] sm:$0xff]  ;;  %v733_v45 = vld [vmem:[%s1390_s0 + $0x40] sm:$0xff] }
  0xd3   :  { %v790_v24 = vpop.eup %789  ;;  %801 = vtanh.f32 %v271_v16  ;;  %v327_v16 = vmul.f32 %v311_v46, %v199_v62  ;;  %v736_v62 = vld [vmem:[%s1390_s0 + $0x58] sm:$0xff]  ;;  %v432_v58 = vpack.c.bf16 %v735_v55, %v733_v45 }
  0xd4   :  { %v792_v27 = vpop.eup %791  ;;  %v314_v32 = vadd.f32 1.0, %v790_v24  ;;  %v316_v37 = vmul.f32 %v300_v33, %v188_v0 }
  0xd5   :  { %v794_v36 = vpop.eup %793  ;;  %v315_v43 = vadd.f32 1.0, %v792_v27  ;;  %v337_v27 = vpack.c.bf16 %v327_v16, %v325_v63  ;;  %v1193_v16 = vpop.permute.xlu1 %352 }
  0xd6   :  { %v796_v49 = vpop.eup %795  ;;  %v330_v50 = vmul.f32 %v314_v32, %v202_v30  ;;  %v306_v5 = vadd.f32 1.0, %v794_v36  ;;  %v191_v36 = vmul.f32 0.5, %v1010_v2  ;;  %v738_v2 = vld [vmem:[%s1390_s0 + $0x68] sm:$0xff]  ;;  %v1203_v63 = vpop.permute.xlu2 %357 }
  0xd7   :  { %v798_v56 = vpop.eup %797  ;;  %v331_v12 = vmul.f32 %v315_v43, %v203_v40  ;;  %v307_v17 = vadd.f32 1.0, %v796_v49  ;;  %v318_v40 = vmul.f32 %v302_v26, %v190_v4  ;;  %v317_v49 = vmul.f32 %v301_v11, %v189_v10 }
  0xd8   :  { %v800_v59 = vpop.eup %799  ;;  %v338_v1 = vpack.c.bf16 %v330_v50, %v328_v44  ;;  %v304_v21 = vadd.f32 1.0, %v798_v56  ;;  %v322_v24 = vmul.f32 %v306_v5, %v194_v6  ;;  %v434_v44 = vpack.c.bf16 %v739_v51, %v737_v18 }
  0xd9   :  { %v802_v8 = vpop.eup %801  ;;  %v339_v13 = vpack.c.bf16 %v331_v12, %v329_v57  ;;  %v305_v22 = vadd.f32 1.0, %v800_v59  ;;  %v323_v29 = vmul.f32 %v307_v17, %v195_v9  ;;  %v332_v50 = vpack.c.bf16 %v318_v40, %v316_v37  ;;  %v1136_v57 = vld [vmem:[%s1394_s3] sm:$0xff]  ;;  %v734_v12 = vld [vmem:[%s1390_s0 + $0x48] sm:$0xff] }
  0xda   :  { %381 = vmatpush.bf16.msra.mxu2 %v338_v1  ;;  %v303_v30 = vadd.f32 1.0, %v802_v8  ;;  %v320_v32 = vmul.f32 %v304_v21, %v192_v52  ;;  %v435_v54 = vpack.c.bf16 %v740_v42, %v738_v2  ;;  %v433_v59 = vpack.c.bf16 %v736_v62, %v734_v12  ;;  %v1151_v1 = vld [vmem:[%s1394_s3 + $0x8] sm:$0xff] }
  0xdb   :  { %400 = vmatpush.bf16.msra.mxu3 %v339_v13  ;;  %v321_v7 = vmul.f32 %v305_v22, %v193_v53 }
  0xdc   :  { %v334_v38 = vpack.c.bf16 %v322_v24, %v320_v32  ;;  %v319_v46 = vmul.f32 %v303_v30, %v191_v36 }
  0xdd   :  { %v335_v43 = vpack.c.bf16 %v323_v29, %v321_v7 }
  0xde   :  { %382 = vmatpush.bf16.msra.mxu2 %v336_v23  ;;  %v333_v56 = vpack.c.bf16 %v319_v46, %v317_v49 }
  0xdf   :  { %401 = vmatpush.bf16.msra.mxu3 %v337_v27 }
  0xe2   :  { %383 = vmatpush.bf16.msra.mxu2 %v334_v38 }
  0xe3   :  { %402 = vmatpush.bf16.msra.mxu3 %v335_v43 }
  0xe6   :  { %384 = vmatpush.bf16.msra.mxu2 %v332_v50 }
  0xe7   :  { %403 = vmatpush.bf16.msra.mxu3 %v333_v56 }
  0xe9   :  { %729 = vmatmul.msk.bf16.vlgmr.msra.gmra.mxu2 %vm370_vm1, %v1136_v57 }
  0xea   :  { %442 = vmatpush.bf16.msrb.mxu2 %v434_v44  ;;  %731 = vmatmul.msk.bf16.vlgmr.msra.gmra.mxu3 %vm370_vm1, %v1136_v57 }
  0xeb   :  { %471 = vmatpush.bf16.msrb.mxu3 %v435_v54 }
  0xee   :  { %443 = vmatpush.bf16.msrb.mxu2 %v432_v58 }
  0xef   :  { %472 = vmatpush.bf16.msrb.mxu3 %v433_v59 }
  0xf9   :  { %730 = vmatmul.msk.bf16.gmra.mxu2 %vm370_vm1, %v1151_v1 }
  0xfa   :  { %732 = vmatmul.msk.bf16.gmra.mxu3 %vm370_vm1, %v1151_v1 }
 0x109   :  { %741 = vmatmul.msk.bf16.vlgmr.msrb.gmra.mxu2 %vm117_vm0, %v899_v15 }
 0x10a   :  { %745 = vmatmul.msk.bf16.vlgmr.msrb.gmra.mxu3 %vm117_vm0, %v899_v15 }
 0x119   :  { %742 = vmatmul.msk.bf16.gmra.mxu2 %vm117_vm0, %v920_v20 }
 0x11a   :  { %746 = vmatmul.msk.bf16.gmra.mxu3 %vm117_vm0, %v920_v20 }
 0x129   :  { %743 = vmatmul.msk.bf16.gmra.mxu2 %vm117_vm0, %v941_v25 }
 0x12a   :  { %747 = vmatmul.msk.bf16.gmra.mxu3 %vm117_vm0, %v941_v25  ;;  %v1183_v25 = vpop.permute.xlu0 %347 }
 0x139   :  { %744 = vmatmul.msk.bf16.gmra.mxu2 %vm117_vm0, %v956_v28 }
 0x13a   :  { %748 = vmatmul.msk.bf16.gmra.mxu3 %vm117_vm0, %v956_v28 }
 0x16c   :  { %v386_v15 = vpop.f32.mrf.mxu2 }
 0x16d   :  { %v387_v3 = vadd.f32 %v386_v15, %v1173_v19  ;;  %v405_v5 = vpop.f32.mrf.mxu3 }
 0x16e   :  { %v406_v20 = vadd.f32 %v405_v5, %v1173_v19 }
 0x16f   :  { %415 = vst [vmem:[%s1395_s5] sm:$0xff] %v387_v3 }
 0x170   :  { %416 = vst [vmem:[%s1395_s5 + $0x8] sm:$0xff] %v406_v20 }
 0x174   :  { %v388_v8 = vpop.f32.mrf.mxu2 }
 0x175   :  { %v389_v28 = vadd.f32 %v388_v8, %v1183_v25  ;;  %v407_v13 = vpop.f32.mrf.mxu3 }
 0x176   :  { %v408_v14 = vadd.f32 %v407_v13, %v1183_v25 }
 0x177   :  { %417 = vst [vmem:[%s1395_s5 + $0x10] sm:$0xff] %v389_v28 }
 0x178   :  { %418 = vst [vmem:[%s1395_s5 + $0x18] sm:$0xff] %v408_v14 }
 0x17c   :  { %v391_v17 = vpop.f32.mrf.mxu2 }
 0x17d   :  { %v392_v60 = vadd.f32 %v391_v17, %v1193_v16  ;;  %v410_v6 = vpop.f32.mrf.mxu3 }
 0x17e   :  { %v411_v21 = vadd.f32 %v410_v6, %v1193_v16 }
 0x17f   :  { %419 = vst [vmem:[%s1395_s5 + $0x20] sm:$0xff] %v392_v60 }
 0x180   :  { %420 = vst [vmem:[%s1395_s5 + $0x28] sm:$0xff] %v411_v21 }
 0x184   :  { %v393_v9 = vpop.f32.mrf.mxu2 }
 0x185   :  { %v394_v22 = vadd.f32 %v393_v9, %v1203_v63  ;;  %v412_v23 = vpop.f32.mrf.mxu3 }
 0x186   :  { %v413_v52 = vadd.f32 %v412_v23, %v1203_v63 }
 0x187   :  { %421 = vst [vmem:[%s1395_s5 + $0x30] sm:$0xff] %v394_v22 }
 0x188   :  { %422 = vst [vmem:[%s1395_s5 + $0x38] sm:$0xff] %v413_v52 }
 0x18c   :  { %v445_v24 = vpop.f32.mrf.mxu2 }
 0x18d   :  { %v474_v26 = vpop.f32.mrf.mxu3  ;;  %v1214_v33 = vadd.f32 %v445_v24, %v970_v41 }
 0x18e   :  { %v1218_v11 = vadd.f32 %v474_v26, %v970_v41 }
 0x18f   :  { %v510_v36 = vmul.f32 0.044715, %v1214_v33 }
 0x190   :  { %v511_v0 = vmul.f32 0.044715, %v1218_v11 }
 0x191   :  { %v526_v40 = vmul.f32 %v510_v36, %v1214_v33 }
 0x192   :  { %v527_v41 = vmul.f32 %v511_v0, %v1218_v11 }
 0x193   :  { %v542_v2 = vmul.f32 %v526_v40, %v1214_v33 }
 0x194   :  { %v447_v27 = vpop.f32.mrf.mxu2  ;;  %v543_v54 = vmul.f32 %v527_v41, %v1218_v11 }
 0x195   :  { %v476_v53 = vpop.f32.mrf.mxu3  ;;  %v1223_v18 = vadd.f32 %v447_v27, %v981_v48 }
 0x196   :  { %v1245_v45 = vadd.f32 %v476_v53, %v981_v48  ;;  %v559_v8 = vadd.f32 %v543_v54, %v1218_v11 }
 0x197   :  { %v512_v42 = vmul.f32 0.044715, %v1223_v18 }
 0x198   :  { %v513_v28 = vmul.f32 0.044715, %v1245_v45  ;;  %v575_v24 = vmul.f32 0.7978846, %v559_v8 }
 0x199   :  { %v528_v55 = vmul.f32 %v512_v42, %v1223_v18 }
 0x19b   :  { %v544_v14 = vmul.f32 %v528_v55, %v1223_v18 }
 0x19c   :  { %v450_v29 = vpop.f32.mrf.mxu2 }
 0x19d   :  { %v479_v30 = vpop.f32.mrf.mxu3  ;;  %v1259_v48 = vadd.f32 %v450_v29, %v979_v47  ;;  %v560_v53 = vadd.f32 %v544_v14, %v1223_v18  ;;  %v529_v29 = vmul.f32 %v513_v28, %v1245_v45 }
 0x19f   :  { %v576_v54 = vmul.f32 0.7978846, %v560_v53 }
 0x1a4   :  { %v452_v32 = vpop.f32.mrf.mxu2 }
 0x1a5   :  { %v481_v4 = vpop.f32.mrf.mxu3  ;;  %v1249_v56 = vadd.f32 %v452_v32, %v1001_v61 }
 0x1a6   :  { %v1254_v58 = vadd.f32 %v481_v4, %v1001_v61  ;;  %v1267_v61 = vadd.f32 %v479_v30, %v979_v47 }
 0x1a7   :  { %v516_v17 = vmul.f32 0.044715, %v1249_v56 }
 0x1a8   :  { %v517_v9 = vmul.f32 0.044715, %v1254_v58  ;;  %v515_v26 = vmul.f32 0.044715, %v1267_v61 }
 0x1ac   :  { %v455_v7 = vpop.f32.mrf.mxu2 }
 0x1ad   :  { %v484_v38 = vpop.f32.mrf.mxu3  ;;  %v1226_v51 = vadd.f32 %v455_v7, %v964_v34  ;;  %v532_v7 = vmul.f32 %v516_v17, %v1249_v56  ;;  %v545_v17 = vmul.f32 %v529_v29, %v1245_v45 }
 0x1ae   :  { %v1229_v43 = vadd.f32 %v484_v38, %v964_v34  ;;  %v558_v34 = vadd.f32 %v542_v2, %v1214_v33 }
 0x1af   :  { %v518_v37 = vmul.f32 0.044715, %v1226_v51 }
 0x1b0   :  { %v519_v44 = vmul.f32 0.044715, %v1229_v43  ;;  %v574_v20 = vmul.f32 0.7978846, %v558_v34  ;;  %v531_v34 = vmul.f32 %v515_v26, %v1267_v61 }
 0x1b1   :  { %v534_v62 = vmul.f32 %v518_v37, %v1226_v51 }
 0x1b2   :  { %v535_v15 = vmul.f32 %v519_v44, %v1229_v43  ;;  %803 = vtanh.f32 %v574_v20 }
 0x1b3   :  { %v550_v21 = vmul.f32 %v534_v62, %v1226_v51  ;;  %805 = vtanh.f32 %v575_v24 }
 0x1b4   :  { %v457_v10 = vpop.f32.mrf.mxu2  ;;  %v551_v23 = vmul.f32 %v535_v15, %v1229_v43  ;;  %807 = vtanh.f32 %v576_v54 }
 0x1b5   :  { %v486_v46 = vpop.f32.mrf.mxu3  ;;  %v1236_v49 = vadd.f32 %v457_v10, %v968_v39  ;;  %v566_v4 = vadd.f32 %v550_v21, %v1226_v51  ;;  %v533_v10 = vmul.f32 %v517_v9, %v1254_v58  ;;  %v547_v21 = vmul.f32 %v531_v34, %v1267_v61 }
 0x1b6   :  { %v1240_v50 = vadd.f32 %v486_v46, %v968_v39  ;;  %v567_v40 = vadd.f32 %v551_v23, %v1229_v43 }
 0x1b7   :  { %v520_v12 = vmul.f32 0.044715, %v1236_v49  ;;  %v549_v20 = vmul.f32 %v533_v10, %v1254_v58  ;;  %v563_v29 = vadd.f32 %v547_v21, %v1267_v61 }
 0x1b8   :  { %v521_v39 = vmul.f32 0.044715, %v1240_v50  ;;  %v1305_v55 = vpop.eup %803 }
 0x1b9   :  { %v536_v6 = vmul.f32 %v520_v12, %v1236_v49  ;;  %v1318_v9 = vpop.eup %805  ;;  %v565_v24 = vadd.f32 %v549_v20, %v1254_v58 }
 0x1ba   :  { %v537_v47 = vmul.f32 %v521_v39, %v1240_v50  ;;  %v582_v39 = vmul.f32 0.7978846, %v566_v4  ;;  %v561_v4 = vadd.f32 %v545_v17, %v1245_v45 }
 0x1bb   :  { %v552_v32 = vmul.f32 %v536_v6, %v1236_v49 }
 0x1bc   :  { %v460_v59 = vpop.f32.mrf.mxu2  ;;  %v553_v0 = vmul.f32 %v537_v47, %v1240_v50  ;;  %809 = vtanh.f32 %v582_v39 }
 0x1bd   :  { %v1262_v3 = vadd.f32 %v460_v59, %v962_v31  ;;  %v489_v5 = vpop.f32.mrf.mxu3  ;;  %v568_v62 = vadd.f32 %v552_v32, %v1236_v49  ;;  %v548_v59 = vmul.f32 %v532_v7, %v1249_v56  ;;  %v1329_v7 = vpop.eup %807 }
 0x1be   :  { %v1270_v13 = vadd.f32 %v489_v5, %v962_v31  ;;  %v514_v31 = vmul.f32 0.044715, %v1259_v48  ;;  %v569_v5 = vadd.f32 %v553_v0, %v1240_v50 }
 0x1bf   :  { %v522_v60 = vmul.f32 0.044715, %v1262_v3  ;;  %v584_v47 = vmul.f32 0.7978846, %v568_v62  ;;  %v564_v23 = vadd.f32 %v548_v59, %v1249_v56 }
 0x1c0   :  { %v523_v22 = vmul.f32 0.044715, %v1270_v13  ;;  %v530_v42 = vmul.f32 %v514_v31, %v1259_v48 }
 0x1c1   :  { %v538_v52 = vmul.f32 %v522_v60, %v1262_v3  ;;  %v580_v32 = vmul.f32 0.7978846, %v564_v23 }
 0x1c2   :  { %v539_v27 = vmul.f32 %v523_v22, %v1270_v13  ;;  %v546_v14 = vmul.f32 %v530_v42, %v1259_v48  ;;  %v810_v0 = vpop.eup %809  ;;  %v577_v42 = vmul.f32 0.7978846, %v561_v4 }
 0x1c3   :  { %v554_v30 = vmul.f32 %v538_v52, %v1262_v3  ;;  %v585_v52 = vmul.f32 0.7978846, %v569_v5  ;;  %v614_v23 = vadd.f32 1.0, %v810_v0 }
 0x1c4   :  { %v462_v36 = vpop.f32.mrf.mxu2  ;;  %v555_v38 = vmul.f32 %v539_v27, %v1270_v13  ;;  %v562_v27 = vadd.f32 %v546_v14, %v1259_v48 }
 0x1c5   :  { %v1296_v46 = vadd.f32 %v462_v36, %v966_v35  ;;  %v491_v2 = vpop.f32.mrf.mxu3  ;;  %v570_v41 = vadd.f32 %v554_v30, %v1262_v3 }
 0x1c6   :  { %v1301_v37 = vadd.f32 %v491_v2, %v966_v35  ;;  %v571_v44 = vadd.f32 %v555_v38, %v1270_v13  ;;  %v583_v35 = vmul.f32 0.7978846, %v567_v40  ;;  %v581_v38 = vmul.f32 0.7978846, %v565_v24 }
 0x1c7   :  { %v524_v12 = vmul.f32 0.044715, %v1296_v46  ;;  %v586_v28 = vmul.f32 0.7978846, %v570_v41  ;;  %v578_v40 = vmul.f32 0.7978846, %v562_v27 }
 0x1c8   :  { %v525_v15 = vmul.f32 0.044715, %v1301_v37  ;;  %v587_v6 = vmul.f32 0.7978846, %v571_v44  ;;  %811 = vtanh.f32 %v583_v35  ;;  %v579_v2 = vmul.f32 0.7978846, %v563_v29 }
 0x1c9   :  { %v540_v8 = vmul.f32 %v524_v12, %v1296_v46  ;;  %813 = vtanh.f32 %v586_v28  ;;  %v508_v5 = vmul.f32 0.5, %v1296_v46  ;;  %v507_v28 = vmul.f32 0.5, %v1270_v13 }
 0x1ca   :  { %v541_v60 = vmul.f32 %v525_v15, %v1301_v37  ;;  %815 = vtanh.f32 %v587_v6  ;;  %v506_v15 = vmul.f32 0.5, %v1262_v3  ;;  %v509_v14 = vmul.f32 0.5, %v1301_v37 }
 0x1cb   :  { %v556_v22 = vmul.f32 %v540_v8, %v1296_v46  ;;  %817 = vtanh.f32 %v584_v47  ;;  %v504_v47 = vmul.f32 0.5, %v1236_v49  ;;  %v502_v13 = vmul.f32 0.5, %v1226_v51 }
 0x1cc   :  { %v557_v31 = vmul.f32 %v541_v60, %v1301_v37  ;;  %819 = vtanh.f32 %v585_v52  ;;  %v498_v51 = vmul.f32 0.5, %v1259_v48  ;;  %v607_v48 = vadd.f32 1.0, %v1318_v9 }
 0x1cd   :  { %v572_v26 = vadd.f32 %v556_v22, %v1296_v46  ;;  %v505_v46 = vmul.f32 0.5, %v1240_v50  ;;  %v630_v49 = vmul.f32 %v614_v23, %v502_v13 }
 0x1ce   :  { %v573_v53 = vadd.f32 %v557_v31, %v1301_v37  ;;  %v812_v10 = vpop.eup %811 }
 0x1cf   :  { %v588_v30 = vmul.f32 0.7978846, %v572_v26  ;;  %v814_v41 = vpop.eup %813  ;;  %v615_v24 = vadd.f32 1.0, %v812_v10 }
 0x1d0   :  { %v589_v36 = vmul.f32 0.7978846, %v573_v53  ;;  %v816_v44 = vpop.eup %815  ;;  %v618_v12 = vadd.f32 1.0, %v814_v41 }
 0x1d1   :  { %821 = vtanh.f32 %v588_v30  ;;  %v818_v34 = vpop.eup %817  ;;  %v619_v39 = vadd.f32 1.0, %v816_v44 }
 0x1d2   :  { %823 = vtanh.f32 %v589_v36  ;;  %v820_v54 = vpop.eup %819  ;;  %v616_v20 = vadd.f32 1.0, %v818_v34  ;;  %v634_v21 = vmul.f32 %v618_v12, %v506_v15 }
 0x1d3   :  { %825 = vtanh.f32 %v580_v32  ;;  %v617_v60 = vadd.f32 1.0, %v820_v54  ;;  %v635_v52 = vmul.f32 %v619_v39, %v507_v28  ;;  %v503_v32 = vmul.f32 0.5, %v1229_v43 }
 0x1d4   :  { %827 = vtanh.f32 %v581_v38  ;;  %v632_v53 = vmul.f32 %v616_v20, %v504_v47  ;;  %v500_v38 = vmul.f32 0.5, %v1249_v56  ;;  %v499_v43 = vmul.f32 0.5, %v1267_v61 }
 0x1d5   :  { %829 = vtanh.f32 %v578_v40  ;;  %v633_v4 = vmul.f32 %v617_v60, %v505_v46  ;;  %v631_v50 = vmul.f32 %v615_v24, %v503_v32  ;;  %v501_v40 = vmul.f32 0.5, %v1254_v58 }
 0x1d6   :  { %831 = vtanh.f32 %v579_v2  ;;  %v642_v2 = vpack.c.bf16 %v632_v53, %v630_v49  ;;  %v496_v56 = vmul.f32 0.5, %v1223_v18  ;;  %v497_v39 = vmul.f32 0.5, %v1245_v45 }
 0x1d7   :  { %v822_v62 = vpop.eup %821  ;;  %833 = vtanh.f32 %v577_v42  ;;  %v608_v42 = vadd.f32 1.0, %v1329_v7  ;;  %v643_v44 = vpack.c.bf16 %v633_v4, %v631_v50  ;;  %v494_v7 = vmul.f32 0.5, %v1214_v33 }
 0x1d8   :  { %v824_v59 = vpop.eup %823  ;;  %v620_v35 = vadd.f32 1.0, %v822_v62  ;;  %v606_v62 = vadd.f32 1.0, %v1305_v55  ;;  %v495_v61 = vmul.f32 0.5, %v1218_v11 }
 0x1d9   :  { %v826_v8 = vpop.eup %825  ;;  %v621_v17 = vadd.f32 1.0, %v824_v59  ;;  %v624_v15 = vmul.f32 %v608_v42, %v496_v56 }
 0x1da   :  { %v828_v6 = vpop.eup %827  ;;  %v636_v22 = vmul.f32 %v620_v35, %v508_v5  ;;  %v612_v37 = vadd.f32 1.0, %v826_v8  ;;  %v622_v20 = vmul.f32 %v606_v62, %v494_v7  ;;  %v623_v18 = vmul.f32 %v607_v48, %v495_v61 }
 0x1db   :  { %v830_v31 = vpop.eup %829  ;;  %v637_v3 = vmul.f32 %v621_v17, %v509_v14  ;;  %v613_v36 = vadd.f32 1.0, %v828_v6 }
 0x1dc   :  { %v832_v26 = vpop.eup %831  ;;  %v644_v27 = vpack.c.bf16 %v636_v22, %v634_v21  ;;  %v610_v0 = vadd.f32 1.0, %v830_v31  ;;  %v628_v41 = vmul.f32 %v612_v37, %v500_v38  ;;  %v638_v8 = vpack.c.bf16 %v624_v15, %v622_v20 }
 0x1dd   :  { %v834_v29 = vpop.eup %833  ;;  %v645_v30 = vpack.c.bf16 %v637_v3, %v635_v52  ;;  %v611_v10 = vadd.f32 1.0, %v832_v26  ;;  %v629_v34 = vmul.f32 %v613_v36, %v501_v40 }
 0x1de   :  { %650 = vmatpush.bf16.msrb.mxu0 %v644_v27  ;;  %v609_v54 = vadd.f32 1.0, %v834_v29  ;;  %v626_v12 = vmul.f32 %v610_v0, %v498_v51 }
 0x1df   :  { %669 = vmatpush.bf16.msrb.mxu1 %v645_v30  ;;  %v627_v58 = vmul.f32 %v611_v10, %v499_v43 }
 0x1e0   :  { %v640_v59 = vpack.c.bf16 %v628_v41, %v626_v12  ;;  %v625_v35 = vmul.f32 %v609_v54, %v497_v39 }
 0x1e1   :  { %v641_v5 = vpack.c.bf16 %v629_v34, %v627_v58 }
 0x1e2   :  { %651 = vmatpush.bf16.msrb.mxu0 %v642_v2  ;;  %v639_v55 = vpack.c.bf16 %v625_v35, %v623_v18 }
 0x1e3   :  { %670 = vmatpush.bf16.msrb.mxu1 %v643_v44 }
 0x1e6   :  { %652 = vmatpush.bf16.msrb.mxu0 %v640_v59 }
 0x1e7   :  { %671 = vmatpush.bf16.msrb.mxu1 %v641_v5 }
 0x1ea   :  { %653 = vmatpush.bf16.msrb.mxu0 %v638_v8 }
 0x1eb   :  { %672 = vmatpush.bf16.msrb.mxu1 %v639_v55 }
 0x1ed   :  { %749 = vmatmul.msk.bf16.vlgmr.msrb.gmra.mxu0 %vm370_vm1, %v1136_v57 }
 0x1ee   :  { %751 = vmatmul.msk.bf16.vlgmr.msrb.gmra.mxu1 %vm370_vm1, %v1136_v57 }
 0x1fd   :  { %750 = vmatmul.msk.bf16.gmra.mxu0 %vm370_vm1, %v1151_v1 }
 0x1fe   :  { %752 = vmatmul.msk.bf16.gmra.mxu1 %vm370_vm1, %v1151_v1 }
 0x26a   :  { %v655_v33 = vpop.f32.mrf.mxu0 }
 0x26b   :  { %v656_v11 = vadd.f32 %v655_v33, %v1173_v19  ;;  %v674_v45 = vpop.f32.mrf.mxu1 }
 0x26c   :  { %v675_v9 = vadd.f32 %v674_v45, %v1173_v19 }
 0x26d   :  { %753 = vst [vmem:[%s1395_s5 + $0x40] sm:$0xff] %v656_v11 }
 0x26e   :  { %754 = vst [vmem:[%s1395_s5 + $0x48] sm:$0xff] %v675_v9 }
 0x272   :  { %v657_v57 = vpop.f32.mrf.mxu0 }
 0x273   :  { %v658_v28 = vadd.f32 %v657_v57, %v1183_v25  ;;  %v676_v14 = vpop.f32.mrf.mxu1 }
 0x274   :  { %v677_v1 = vadd.f32 %v676_v14, %v1183_v25 }
 0x275   :  { %755 = vst [vmem:[%s1395_s5 + $0x50] sm:$0xff] %v658_v28 }
 0x276   :  { %756 = vst [vmem:[%s1395_s5 + $0x58] sm:$0xff] %v677_v1 }
 0x27a   :  { %v660_v19 = vpop.f32.mrf.mxu0 }
 0x27b   :  { %v661_v17 = vadd.f32 %v660_v19, %v1193_v16  ;;  %v679_v60 = vpop.f32.mrf.mxu1 }
 0x27c   :  { %v680_v6 = vadd.f32 %v679_v60, %v1193_v16 }
 0x27d   :  { %757 = vst [vmem:[%s1395_s5 + $0x60] sm:$0xff] %v661_v17 }
 0x27e   :  { %758 = vst [vmem:[%s1395_s5 + $0x68] sm:$0xff] %v680_v6 }
 0x282   :  { %v662_v25 = vpop.f32.mrf.mxu0 }
 0x283   :  { %v663_v21 = vadd.f32 %v662_v25, %v1203_v63  ;;  %v681_v22 = vpop.f32.mrf.mxu1 }
 0x284   :  { %v682_v47 = vadd.f32 %v681_v22, %v1203_v63 }
 0x285   :  { %759 = vst [vmem:[%s1395_s5 + $0x70] sm:$0xff] %v663_v21 }
 0x286   :  { %760 = vst [vmem:[%s1395_s5 + $0x78] sm:$0xff] %v682_v47 }

</bundles_post_ra>
